<compile_context>
chip_gen: v7x
topology: tpu7x:2x2x1
jax: 0.10.0
libtpu: 0.0.40
codegen_flags: <defaults>
</compile_context>

<pallas_src>
import math

import jax
import jax.numpy as jnp
from jax.experimental import pallas as pl
from jax.experimental.pallas import tpu as pltpu

# ------------------------- hyper-parameters ('arcface') ----------------------
S = 30.0
M = 0.4
EPS = 1e-7
COS_M = math.cos(M)
SIN_M = math.sin(M)
NEG_INF = -1e30  # finite "-inf" so (-inf) - (-inf) never produces NaN


def _round_up(v, m):
    return ((v + m - 1) // m) * m


# --------------------------------- kernel ------------------------------------
def _make_kernel(n_classes, tc, needs_mask):
    """Kernel closure over the true class count / class tile / static mask flag."""

    def kernel(x_ref, w_ref, tgt_ref, out_ref, xn_ref, m_acc, l_acc, t_acc):
        ci = pl.program_id(1)                    # class-tile index (inner axis)
        last = pl.num_programs(1) - 1
        tn = x_ref.shape[0]

        # ---- once per batch tile: normalize x (f32 math) into bf16 scratch,
        # ---- and reset the running accumulators.
        @pl.when(ci == 0)
        def _():
            x = x_ref[...].astype(jnp.float32)               # (tn, D) bf16 -> f32
            # F.normalize(input, p=2, dim=1): x / max(||x||, 1e-12)  (via rsqrt)
            sumsq = jnp.sum(x * x, axis=1, keepdims=True)
            xn_ref[...] = (x * jax.lax.rsqrt(jnp.maximum(sumsq, 1e-24))
                           ).astype(jnp.bfloat16)
            m_acc[...] = jnp.full(m_acc.shape, NEG_INF, jnp.float32)
            l_acc[...] = jnp.zeros(l_acc.shape, jnp.float32)
            t_acc[...] = jnp.zeros(t_acc.shape, jnp.float32)

        # fc (bias=False): logits tile = x_n @ W_tile.T ; bf16 x bf16 -> f32,
        # contraction over dim 1 of both operands (no materialized transpose).
        logits = jax.lax.dot_general(
            xn_ref[...], w_ref[...], (((1,), (1,)), ((), ())),
            preferred_element_type=jnp.float32)              # (tn, tc) f32

        # capture the (raw, unclipped) target-class logit
        col = jax.lax.broadcasted_iota(jnp.int32, (tn, tc), 1) + ci * tc
        onehot = col == tgt_ref[...]                         # (tn, tc)
        t_acc[...] += jnp.sum(jnp.where(onehot, logits, 0.0),
                              axis=1, keepdims=True)

        # ---- online (max-subtracted) running sum of exp(S * logit) ----------
        def lse_update(sl):
            m_old = m_acc[...]
            m_new = jnp.maximum(m_old, jnp.max(sl, axis=1, keepdims=True))
            l_acc[...] = (jnp.exp(m_old - m_new) * l_acc[...]
                          + jnp.sum(jnp.exp(sl - m_new), axis=1, keepdims=True))
            m_acc[...] = m_new

        if needs_mask:
            # class padding is always confined to the LAST class tile, so only
            # that tile pays for the validity mask.
            @pl.when(ci != last)
            def _():
                lse_update(S * logits)

            @pl.when(ci == last)
            def _():
                valid = col < n_classes
                lse_update(jnp.where(valid, S * logits, NEG_INF))
        else:
            lse_update(S * logits)

        # ---------------- finalize this batch tile on the last class tile ----
        @pl.when(ci == last)
        def _():
            t_raw = t_acc[...]
            m_run = m_acc[...]
            l_run = l_acc[...]

            t_cl = jnp.clip(t_raw, -1.0 + EPS, 1.0 - EPS)
            # arcface: s*cos(acos(t)+m) == s*(t*cos(m) - sqrt(1-t^2)*sin(m))
            num = S * (t_cl * COS_M - jnp.sqrt(1.0 - t_cl * t_cl) * SIN_M)

            # excl = sum_{j != y} exp(S*logit_j), stabilized by m_all
            m_all = jnp.maximum(m_run, num)
            excl = jnp.maximum(
                l_run * jnp.exp(m_run - m_all) - jnp.exp(S * t_raw - m_all),
                0.0)
            log_den = m_all + jnp.log(jnp.exp(num - m_all) + excl)
            out_ref[...] = num - log_den                     # per-row L

    return kernel


# -------------------------------- wrapper -------------------------------------
@jax.jit
def angular_penalty_sm_loss(x, weight, target):
    """x: (N, in_fts), weight: (out_fts, in_fts), target: (N,) int -> scalar."""
    n, d = x.shape
    n_classes = weight.shape[0]

    # Tiles: batch tile (sublanes, multiple of 8, capped to keep the (tn, tc)
    # f32 logits tile small enough to avoid vreg spills on v5e), class tile
    # (lanes, multiple of 128).  Per-tile VMEM footprint here is a few MiB —
    # comfortably under the default scoped VMEM limit on v5e/v6e/v7x.
    d_pad = _round_up(d, 128)
    tn = min(_round_up(n, 8), 256)
    n_pad = _round_up(n, tn)
    tc = min(512, _round_up(n_classes, 128))
    c_pad = _round_up(n_classes, tc)
    needs_mask = c_pad != n_classes          # static: padding only in last tile

    # bf16 in HBM (halves the dominant streaming traffic and feeds the MXU at
    # its bf16 peak).  Only the padded bf16 copies are materialized — no f32
    # padded copy of the classifier weight.
    x_p = jnp.pad(x.astype(jnp.bfloat16), ((0, n_pad - n), (0, d_pad - d)))
    w_p = jnp.pad(weight.astype(jnp.bfloat16),
                  ((0, c_pad - n_classes), (0, d_pad - d)))
    tgt_p = jnp.pad(target.astype(jnp.int32).reshape(n, 1),
                    ((0, n_pad - n), (0, 0)))

    # batch tiles OUTER (parallel across TCs), class tiles INNER (reduction).
    grid = (n_pad // tn, c_pad // tc)

    l_rows = pl.pallas_call(
        _make_kernel(n_classes, tc, needs_mask),
        out_shape=jax.ShapeDtypeStruct((n_pad, 1), jnp.float32),
        grid_spec=pltpu.PrefetchScalarGridSpec(
            num_scalar_prefetch=0,
            grid=grid,
            in_specs=[
                # x block index is constant across the class sweep -> fetched
                # exactly once per batch tile (N*D total HBM reads).
                pl.BlockSpec((tn, d_pad), lambda ni, ci: (ni, 0)),
                # W tile streams over the class (reduction) axis.
                pl.BlockSpec((tc, d_pad), lambda ni, ci: (ci, 0)),
                pl.BlockSpec((tn, 1), lambda ni, ci: (ni, 0)),
            ],
            out_specs=pl.BlockSpec((tn, 1), lambda ni, ci: (ni, 0)),
            scratch_shapes=[
                pltpu.VMEM((tn, d_pad), jnp.bfloat16),  # normalized x (bf16)
                pltpu.VMEM((tn, 1), jnp.float32),       # running max of S*logits
                pltpu.VMEM((tn, 1), jnp.float32),       # running sum of exps
                pltpu.VMEM((tn, 1), jnp.float32),       # target logit
            ],
        ),
        compiler_params=pltpu.CompilerParams(
            dimension_semantics=("parallel", "arbitrary")),
    )(x_p, w_p, tgt_p)

    # tiny finalize: -mean over the valid rows
    return -jnp.mean(l_rows[:n, 0])


# ------------------------------ reference (JAX) --------------------------------
def _reference(x, weight, target):
    xn = x / jnp.maximum(jnp.linalg.norm(x, axis=1, keepdims=True), 1e-12)
    logits = xn @ weight.T
    t = jnp.clip(logits[jnp.arange(x.shape[0]), target], -1.0 + EPS, 1.0 - EPS)
    numerator = S * jnp.cos(jnp.arccos(t) + M)
    onehot = jax.nn.one_hot(target, weight.shape[0])
    excl = jnp.sum(jnp.exp(S * logits) * (1.0 - onehot), axis=1)
    L = numerator - jnp.log(jnp.exp(numerator) + excl)
    return -jnp.mean(L)


# --------------------------------- main ---------------------------------------
if __name__ == "__main__":
    N, IN_FTS, OUT_FTS = 8, 32, 10

    key = jax.random.PRNGKey(0)
    kx, kw, kt = jax.random.split(key, 3)

    x = jax.random.normal(kx, (N, IN_FTS), dtype=jnp.float32)
    # nn.Linear default init: U(-1/sqrt(in_fts), 1/sqrt(in_fts))
    bound = 1.0 / math.sqrt(IN_FTS)
    weight = jax.random.uniform(kw, (OUT_FTS, IN_FTS), dtype=jnp.float32,
                                minval=-bound, maxval=bound)
    target = jax.random.randint(kt, (N,), 0, OUT_FTS, dtype=jnp.int32)

    loss = angular_penalty_sm_loss(x, weight, target)
    jax.block_until_ready(loss)

    ref = _reference(x, weight, target)
    # bf16 MXU feed (review item 1) -> slightly looser tolerance vs f32 reference.
    assert jnp.allclose(loss, ref, rtol=2e-2, atol=2e-2), (loss, ref)

    print("KERNEL_OK")
</pallas_src>

<mosaic_0001>
module attributes {stable_mosaic.version = 11 : i64} {
  func.func @kernel(%arg0: i32, %arg1: i32, %arg2: memref<8x128xbf16, #tpu.memory_space<vmem>>, %arg3: memref<128x128xbf16, #tpu.memory_space<vmem>>, %arg4: memref<8x1xi32, #tpu.memory_space<vmem>>, %arg5: memref<8x1xf32, #tpu.memory_space<vmem>>, %arg6: memref<8x128xbf16, #tpu.memory_space<vmem>>, %arg7: memref<8x1xf32, #tpu.memory_space<vmem>>, %arg8: memref<8x1xf32, #tpu.memory_space<vmem>>, %arg9: memref<8x1xf32, #tpu.memory_space<vmem>>) attributes {dimension_semantics = [#tpu.dimension_semantics<parallel>, #tpu.dimension_semantics<arbitrary>], iteration_bounds = array<i64: 1, 1>, scalar_prefetch = 0 : i64, scratch_operands = 4 : i64, tpu.core_type = #tpu.core_type<tc>, window_params = [{transform_indices = @transform_0, window_bounds = array<i64: 8, 128>}, {transform_indices = @transform_1, window_bounds = array<i64: 128, 128>}, {transform_indices = @transform_2, window_bounds = array<i64: 8, 1>}, {transform_indices = @transform_3, window_bounds = array<i64: 8, 1>}]} {
    %c0_i32 = arith.constant 0 : i32
    %0 = arith.cmpi eq, %arg1, %c0_i32 : i32
    %1 = arith.extui %0 : i1 to i32
    %c0_i32_0 = arith.constant 0 : i32
    %2 = arith.cmpi ne, %1, %c0_i32_0 : i32
    scf.if %2 {
      %c0_18 = arith.constant 0 : index
      %c0_19 = arith.constant 0 : index
      %29 = vector.load %arg2[%c0_18, %c0_19] : memref<8x128xbf16, #tpu.memory_space<vmem>>, vector<8x128xbf16>
      %30 = arith.extf %29 : vector<8x128xbf16> to vector<8x128xf32>
      %31 = arith.mulf %30, %30 : vector<8x128xf32>
      %cst_20 = arith.constant dense<0.000000e+00> : vector<8xf32>
      %32 = vector.multi_reduction <add>, %31, %cst_20 [1] : vector<8x128xf32> to vector<8xf32>
      %33 = vector.shape_cast %32 : vector<8xf32> to vector<8x1xf32>
      %cst_21 = arith.constant 1.000000e-24 : f32
      %34 = vector.broadcast %cst_21 : f32 to vector<8x1xf32>
      %35 = arith.maximumf %33, %34 : vector<8x1xf32>
      %36 = math.rsqrt %35 : vector<8x1xf32>
      %37 = vector.broadcast %36 : vector<8x1xf32> to vector<8x128xf32>
      %38 = arith.mulf %30, %37 : vector<8x128xf32>
      %39 = arith.truncf %38 : vector<8x128xf32> to vector<8x128xbf16>
      %c0_22 = arith.constant 0 : index
      %c0_23 = arith.constant 0 : index
      %40 = vector.load %arg6[%c0_22, %c0_23] : memref<8x128xbf16, #tpu.memory_space<vmem>>, vector<8x128xbf16>
      tpu.vector_store %arg6[%c0_22, %c0_23], %39 {strides = array<i32>} : memref<8x128xbf16, #tpu.memory_space<vmem>>, vector<8x128xbf16>,
      %cst_24 = arith.constant -1.000000e+30 : f32
      %41 = vector.broadcast %cst_24 : f32 to vector<8x1xf32>
      %c0_25 = arith.constant 0 : index
      %c0_26 = arith.constant 0 : index
      %42 = vector.load %arg7[%c0_25, %c0_26] : memref<8x1xf32, #tpu.memory_space<vmem>>, vector<8x1xf32>
      tpu.vector_store %arg7[%c0_25, %c0_26], %41 {strides = array<i32>} : memref<8x1xf32, #tpu.memory_space<vmem>>, vector<8x1xf32>,
      %cst_27 = arith.constant 0.000000e+00 : f32
      %43 = vector.broadcast %cst_27 : f32 to vector<8x1xf32>
      %c0_28 = arith.constant 0 : index
      %c0_29 = arith.constant 0 : index
      %44 = vector.load %arg8[%c0_28, %c0_29] : memref<8x1xf32, #tpu.memory_space<vmem>>, vector<8x1xf32>
      tpu.vector_store %arg8[%c0_28, %c0_29], %43 {strides = array<i32>} : memref<8x1xf32, #tpu.memory_space<vmem>>, vector<8x1xf32>,
      %cst_30 = arith.constant 0.000000e+00 : f32
      %45 = vector.broadcast %cst_30 : f32 to vector<8x1xf32>
      %c0_31 = arith.constant 0 : index
      %c0_32 = arith.constant 0 : index
      %46 = vector.load %arg9[%c0_31, %c0_32] : memref<8x1xf32, #tpu.memory_space<vmem>>, vector<8x1xf32>
      tpu.vector_store %arg9[%c0_31, %c0_32], %45 {strides = array<i32>} : memref<8x1xf32, #tpu.memory_space<vmem>>, vector<8x1xf32>,
    } else {
    }
    %c0 = arith.constant 0 : index
    %c0_1 = arith.constant 0 : index
    %3 = vector.load %arg6[%c0, %c0_1] : memref<8x128xbf16, #tpu.memory_space<vmem>>, vector<8x128xbf16>
    %c0_2 = arith.constant 0 : index
    %c0_3 = arith.constant 0 : index
    %4 = vector.load %arg3[%c0_2, %c0_3] : memref<128x128xbf16, #tpu.memory_space<vmem>>, vector<128x128xbf16>
    %cst = arith.constant dense<0.000000e+00> : vector<8x128xf32>
    %5 = tpu.matmul %3, %4, %cst {dimension_numbers = #tpu.dot_dimension_numbers<[1], [1], [0], [0], [0, 0, 1, 0], [], []>} : vector<8x128xbf16>, vector<128x128xbf16>, vector<8x128xf32> -> vector<8x128xf32>
    %6 = tpu.iota {dimensions = array<i32: 1>} : vector<8x128xi32>
    %c128_i32 = arith.constant 128 : i32
    %7 = arith.muli %arg1, %c128_i32 : i32
    %8 = vector.broadcast %7 : i32 to vector<8x128xi32>
    %9 = arith.addi %6, %8 : vector<8x128xi32>
    %c0_4 = arith.constant 0 : index
    %c0_5 = arith.constant 0 : index
    %10 = vector.load %arg4[%c0_4, %c0_5] : memref<8x1xi32, #tpu.memory_space<vmem>>, vector<8x1xi32>
    %11 = vector.broadcast %10 : vector<8x1xi32> to vector<8x128xi32>
    %12 = arith.cmpi eq, %9, %11 : vector<8x128xi32>
    %c0_6 = arith.constant 0 : index
    %c0_7 = arith.constant 0 : index
    %13 = vector.load %arg9[%c0_6, %c0_7] : memref<8x1xf32, #tpu.memory_space<vmem>>, vector<8x1xf32>
    %cst_8 = arith.constant 0.000000e+00 : f32
    %14 = vector.broadcast %cst_8 : f32 to vector<8x128xf32>
    %15 = arith.select %12, %5, %14 : vector<8x128xi1>, vector<8x128xf32>
    %cst_9 = arith.constant dense<0.000000e+00> : vector<8xf32>
    %16 = vector.multi_reduction <add>, %15, %cst_9 [1] : vector<8x128xf32> to vector<8xf32>
    %17 = vector.shape_cast %16 : vector<8xf32> to vector<8x1xf32>
    %18 = arith.addf %13, %17 : vector<8x1xf32>
    %c0_10 = arith.constant 0 : index
    %c0_11 = arith.constant 0 : index
    %19 = vector.load %arg9[%c0_10, %c0_11] : memref<8x1xf32, #tpu.memory_space<vmem>>, vector<8x1xf32>
    tpu.vector_store %arg9[%c0_10, %c0_11], %18 {strides = array<i32>} : memref<8x1xf32, #tpu.memory_space<vmem>>, vector<8x1xf32>,
    %c0_i32_12 = arith.constant 0 : i32
    %20 = arith.cmpi ne, %arg1, %c0_i32_12 : i32
    %21 = arith.extui %20 : i1 to i32
    %c0_i32_13 = arith.constant 0 : i32
    %22 = arith.cmpi ne, %21, %c0_i32_13 : i32
    scf.if %22 {
      %cst_18 = arith.constant 3.000000e+01 : f32
      %29 = vector.broadcast %cst_18 : f32 to vector<8x128xf32>
      %30 = arith.mulf %29, %5 : vector<8x128xf32>
      %c0_19 = arith.constant 0 : index
      %c0_20 = arith.constant 0 : index
      %31 = vector.load %arg7[%c0_19, %c0_20] : memref<8x1xf32, #tpu.memory_space<vmem>>, vector<8x1xf32>
      %cst_21 = arith.constant dense<0xFF800000> : vector<8xf32>
      %32 = vector.multi_reduction <maximumf>, %30, %cst_21 [1] : vector<8x128xf32> to vector<8xf32>
      %33 = vector.shape_cast %32 : vector<8xf32> to vector<8x1xf32>
      %34 = arith.maximumf %31, %33 : vector<8x1xf32>
      %35 = arith.subf %31, %34 : vector<8x1xf32>
      %36 = math.exp %35 : vector<8x1xf32>
      %c0_22 = arith.constant 0 : index
      %c0_23 = arith.constant 0 : index
      %37 = vector.load %arg8[%c0_22, %c0_23] : memref<8x1xf32, #tpu.memory_space<vmem>>, vector<8x1xf32>
      %38 = arith.mulf %36, %37 : vector<8x1xf32>
      %39 = vector.broadcast %34 : vector<8x1xf32> to vector<8x128xf32>
      %40 = arith.subf %30, %39 : vector<8x128xf32>
      %41 = math.exp %40 : vector<8x128xf32>
      %cst_24 = arith.constant dense<0.000000e+00> : vector<8xf32>
      %42 = vector.multi_reduction <add>, %41, %cst_24 [1] : vector<8x128xf32> to vector<8xf32>
      %43 = vector.shape_cast %42 : vector<8xf32> to vector<8x1xf32>
      %44 = arith.addf %38, %43 : vector<8x1xf32>
      %c0_25 = arith.constant 0 : index
      %c0_26 = arith.constant 0 : index
      %45 = vector.load %arg8[%c0_25, %c0_26] : memref<8x1xf32, #tpu.memory_space<vmem>>, vector<8x1xf32>
      tpu.vector_store %arg8[%c0_25, %c0_26], %44 {strides = array<i32>} : memref<8x1xf32, #tpu.memory_space<vmem>>, vector<8x1xf32>,
      %c0_27 = arith.constant 0 : index
      %c0_28 = arith.constant 0 : index
      %46 = vector.load %arg7[%c0_27, %c0_28] : memref<8x1xf32, #tpu.memory_space<vmem>>, vector<8x1xf32>
      tpu.vector_store %arg7[%c0_27, %c0_28], %34 {strides = array<i32>} : memref<8x1xf32, #tpu.memory_space<vmem>>, vector<8x1xf32>,
    } else {
    }
    %c0_i32_14 = arith.constant 0 : i32
    %23 = arith.cmpi eq, %arg1, %c0_i32_14 : i32
    %24 = arith.extui %23 : i1 to i32
    %c0_i32_15 = arith.constant 0 : i32
    %25 = arith.cmpi ne, %24, %c0_i32_15 : i32
    scf.if %25 {
      %c10_i32 = arith.constant 10 : i32
      %29 = vector.broadcast %c10_i32 : i32 to vector<8x128xi32>
      %30 = arith.cmpi slt, %9, %29 : vector<8x128xi32>
      %cst_18 = arith.constant 3.000000e+01 : f32
      %31 = vector.broadcast %cst_18 : f32 to vector<8x128xf32>
      %32 = arith.mulf %31, %5 : vector<8x128xf32>
      %cst_19 = arith.constant -1.000000e+30 : f32
      %33 = vector.broadcast %cst_19 : f32 to vector<8x128xf32>
      %34 = arith.select %30, %32, %33 : vector<8x128xi1>, vector<8x128xf32>
      %c0_20 = arith.constant 0 : index
      %c0_21 = arith.constant 0 : index
      %35 = vector.load %arg7[%c0_20, %c0_21] : memref<8x1xf32, #tpu.memory_space<vmem>>, vector<8x1xf32>
      %cst_22 = arith.constant dense<0xFF800000> : vector<8xf32>
      %36 = vector.multi_reduction <maximumf>, %34, %cst_22 [1] : vector<8x128xf32> to vector<8xf32>
      %37 = vector.shape_cast %36 : vector<8xf32> to vector<8x1xf32>
      %38 = arith.maximumf %35, %37 : vector<8x1xf32>
      %39 = arith.subf %35, %38 : vector<8x1xf32>
      %40 = math.exp %39 : vector<8x1xf32>
      %c0_23 = arith.constant 0 : index
      %c0_24 = arith.constant 0 : index
      %41 = vector.load %arg8[%c0_23, %c0_24] : memref<8x1xf32, #tpu.memory_space<vmem>>, vector<8x1xf32>
      %42 = arith.mulf %40, %41 : vector<8x1xf32>
      %43 = vector.broadcast %38 : vector<8x1xf32> to vector<8x128xf32>
      %44 = arith.subf %34, %43 : vector<8x128xf32>
      %45 = math.exp %44 : vector<8x128xf32>
      %cst_25 = arith.constant dense<0.000000e+00> : vector<8xf32>
      %46 = vector.multi_reduction <add>, %45, %cst_25 [1] : vector<8x128xf32> to vector<8xf32>
      %47 = vector.shape_cast %46 : vector<8xf32> to vector<8x1xf32>
      %48 = arith.addf %42, %47 : vector<8x1xf32>
      %c0_26 = arith.constant 0 : index
      %c0_27 = arith.constant 0 : index
      %49 = vector.load %arg8[%c0_26, %c0_27] : memref<8x1xf32, #tpu.memory_space<vmem>>, vector<8x1xf32>
      tpu.vector_store %arg8[%c0_26, %c0_27], %48 {strides = array<i32>} : memref<8x1xf32, #tpu.memory_space<vmem>>, vector<8x1xf32>,
      %c0_28 = arith.constant 0 : index
      %c0_29 = arith.constant 0 : index
      %50 = vector.load %arg7[%c0_28, %c0_29] : memref<8x1xf32, #tpu.memory_space<vmem>>, vector<8x1xf32>
      tpu.vector_store %arg7[%c0_28, %c0_29], %38 {strides = array<i32>} : memref<8x1xf32, #tpu.memory_space<vmem>>, vector<8x1xf32>,
    } else {
    }
    %c0_i32_16 = arith.constant 0 : i32
    %26 = arith.cmpi eq, %arg1, %c0_i32_16 : i32
    %27 = arith.extui %26 : i1 to i32
    %c0_i32_17 = arith.constant 0 : i32
    %28 = arith.cmpi ne, %27, %c0_i32_17 : i32
    scf.if %28 {
      %c0_18 = arith.constant 0 : index
      %c0_19 = arith.constant 0 : index
      %29 = vector.load %arg9[%c0_18, %c0_19] : memref<8x1xf32, #tpu.memory_space<vmem>>, vector<8x1xf32>
      %c0_20 = arith.constant 0 : index
      %c0_21 = arith.constant 0 : index
      %30 = vector.load %arg7[%c0_20, %c0_21] : memref<8x1xf32, #tpu.memory_space<vmem>>, vector<8x1xf32>
      %c0_22 = arith.constant 0 : index
      %c0_23 = arith.constant 0 : index
      %31 = vector.load %arg8[%c0_22, %c0_23] : memref<8x1xf32, #tpu.memory_space<vmem>>, vector<8x1xf32>
      %cst_24 = arith.constant -0.99999988 : f32
      %cst_25 = arith.constant 0.99999988 : f32
      %32 = vector.broadcast %cst_24 : f32 to vector<8x1xf32>
      %33 = arith.maximumf %32, %29 : vector<8x1xf32>
      %34 = vector.broadcast %cst_25 : f32 to vector<8x1xf32>
      %35 = arith.minimumf %34, %33 : vector<8x1xf32>
      %cst_26 = arith.constant 0.921060979 : f32
      %36 = vector.broadcast %cst_26 : f32 to vector<8x1xf32>
      %37 = arith.mulf %35, %36 : vector<8x1xf32>
      %38 = arith.mulf %35, %35 : vector<8x1xf32>
      %cst_27 = arith.constant 1.000000e+00 : f32
      %39 = vector.broadcast %cst_27 : f32 to vector<8x1xf32>
      %40 = arith.subf %39, %38 : vector<8x1xf32>
      %41 = math.sqrt %40 : vector<8x1xf32>
      %cst_28 = arith.constant 0.389418334 : f32
      %42 = vector.broadcast %cst_28 : f32 to vector<8x1xf32>
      %43 = arith.mulf %41, %42 : vector<8x1xf32>
      %44 = arith.subf %37, %43 : vector<8x1xf32>
      %cst_29 = arith.constant 3.000000e+01 : f32
      %45 = vector.broadcast %cst_29 : f32 to vector<8x1xf32>
      %46 = arith.mulf %45, %44 : vector<8x1xf32>
      %47 = arith.maximumf %30, %46 : vector<8x1xf32>
      %48 = arith.subf %30, %47 : vector<8x1xf32>
      %49 = math.exp %48 : vector<8x1xf32>
      %50 = arith.mulf %31, %49 : vector<8x1xf32>
      %cst_30 = arith.constant 3.000000e+01 : f32
      %51 = vector.broadcast %cst_30 : f32 to vector<8x1xf32>
      %52 = arith.mulf %51, %29 : vector<8x1xf32>
      %53 = arith.subf %52, %47 : vector<8x1xf32>
      %54 = math.exp %53 : vector<8x1xf32>
      %55 = arith.subf %50, %54 : vector<8x1xf32>
      %cst_31 = arith.constant 0.000000e+00 : f32
      %56 = vector.broadcast %cst_31 : f32 to vector<8x1xf32>
      %57 = arith.maximumf %55, %56 : vector<8x1xf32>
      %58 = arith.subf %46, %47 : vector<8x1xf32>
      %59 = math.exp %58 : vector<8x1xf32>
      %60 = arith.addf %59, %57 : vector<8x1xf32>
      %61 = math.log %60 : vector<8x1xf32>
      %62 = arith.addf %47, %61 : vector<8x1xf32>
      %63 = arith.subf %46, %62 : vector<8x1xf32>
      %c0_32 = arith.constant 0 : index
      %c0_33 = arith.constant 0 : index
      %64 = vector.load %arg5[%c0_32, %c0_33] : memref<8x1xf32, #tpu.memory_space<vmem>>, vector<8x1xf32>
      tpu.vector_store %arg5[%c0_32, %c0_33], %63 {strides = array<i32>} : memref<8x1xf32, #tpu.memory_space<vmem>>, vector<8x1xf32>,
    } else {
    }
    return
  }
  func.func @transform_0(%arg0: i32, %arg1: i32) -> (i32, i32) {
    %c0_i32 = arith.constant 0 : i32
    %c0_i32_0 = arith.constant 0 : i32
    return %arg0, %c0_i32 : i32, i32
  }
  func.func @transform_1(%arg0: i32, %arg1: i32) -> (i32, i32) {
    %c0_i32 = arith.constant 0 : i32
    %c0_i32_0 = arith.constant 0 : i32
    return %arg1, %c0_i32 : i32, i32
  }
  func.func @transform_2(%arg0: i32, %arg1: i32) -> (i32, i32) {
    %c0_i32 = arith.constant 0 : i32
    %c0_i32_0 = arith.constant 0 : i32
    return %arg0, %c0_i32 : i32, i32
  }
  func.func @transform_3(%arg0: i32, %arg1: i32) -> (i32, i32) {
    %c0_i32 = arith.constant 0 : i32
    %c0_i32_0 = arith.constant 0 : i32
    return %arg0, %c0_i32 : i32, i32
  }
}

</mosaic_0001>

<bundles_post_ra>
// kernel: angular_penalty_sm_loss.1
= control target key start
LH: loop header
LB: loop body
LE: loop exit
PB: predicated region body
PF: predicated region fallthrough
CT: control target
= control target key end

     0   :  { %v320_v1 = vmov 0.0   ;;  %vm321_vm0 = vmmov 0   ;;  %v322_v10 = vmov 0   ;;  %vm29_vm1 = vcmask 7168   ;;  %s384_s0 = inlined_call_operand.vmem [shape: bf16[8,128], index: 0, kind: input, shape index: {}]   ;;  %s385_s1 = inlined_call_operand.vmem [shape: bf16[128,128], index: 1, kind: input, shape index: {}]   ;;  %s386_s2 = inlined_call_operand.vmem [shape: s32[8,1], index: 2, kind: input, shape index: {}]   ;;  %s387_s3 = inlined_call_operand.vmem [shape: f32[8,1], index: 3, kind: output, shape index: {}]  }
   0x1   :  { %v19_v0 = vld [vmem:[%s384_s0] sm:$0xf]  ;;  %270 = vmatprep.subr.bf16.mxu0 %v320_v1  ;;  %v297_v5 = vld [vmem:[%s385_s1 + $0x8] sm:$0xff]   ;;  %v298_v6 = vld [vmem:[%s385_s1 + $0x10] sm:$0xff]   ;;  %286 = vmatprep.mubr.msk.bf16.mxu0 %vm321_vm0, %v320_v1  ;;  %v323_v20 = vmov -1e+30   ;;  %v138_v21 = vlaneseq }
   0x2   :  { %v20_v2 = vunpack.c.l.bf16 %v19_v0  ;;  %v296_v3 = vld [vmem:[%s385_s1] sm:$0xff]   ;;  %v299_v7 = vld [vmem:[%s385_s1 + $0x18] sm:$0xff]   ;;  %v301_v9 = vld [vmem:[%s385_s1 + $0x28] sm:$0xff]   ;;  %294 = vset.pattern.permute.xlu1 %v322_v10  ;;  %295 = vset.pattern.permute.xlu0 %v322_v10  ;;  %30 = vst.msk [vmem:[#allocation3] sm:$0xff] %vm29_vm1, %v323_v20 }
   0x3   :  { %271 = vmatpush3.bf16.xpose.msra.mxu0 %v296_v3  ;;  %v300_v8 = vld [vmem:[%s385_s1 + $0x20] sm:$0xff]   ;;  %v302_v12 = vld [vmem:[%s385_s1 + $0x30] sm:$0xff]   ;;  %v303_v13 = vld [vmem:[%s385_s1 + $0x38] sm:$0xff]   ;;  %31 = vst.msk [vmem:[#allocation4] sm:$0xff] %vm29_vm1, %v320_v1  ;;  %v139_v22 = vand.u32 127, %v138_v21 }
   0x4   :  { %v21_v4 = vmul.f32 %v20_v2, %v20_v2  ;;  %272 = vmatprep.subr.bf16.mxu0 %v320_v1  ;;  %v143_v11 = vld [vmem:[%s386_s2] sm:$0xff]  ;;  %32 = vst.msk [vmem:[#allocation5] sm:$0xff] %vm29_vm1, %v320_v1 }
   0x5   :  { %145 = vperm.xlu1 %294, %v143_v11   ;;  %vm185_vm2 = vcmp.lt.s32.totalorder %v139_v22, 10 }
   0x6   :  { %22 = vadd.xlane.f32.xlu0 %v21_v4 }
   0x9   :  { %v188_v31 = vld [vmem:[#allocation3] sm:$0xff] }
   0xa   :  { %v195_v62 = vld [vmem:[#allocation4] sm:$0xff] }
   0xb   :  { %273 = vmatpush3.bf16.xpose.msra.mxu0 %v297_v5  ;;  %v148_v34 = vld [vmem:[#allocation5] sm:$0xff] }
   0xc   :  { %274 = vmatprep.subr.bf16.mxu0 %v320_v1 }
  0x13   :  { %275 = vmatpush3.bf16.xpose.msra.mxu0 %v298_v6 }
  0x14   :  { %276 = vmatprep.subr.bf16.mxu0 %v320_v1 }
  0x1b   :  { %277 = vmatpush3.bf16.xpose.msra.mxu0 %v299_v7 }
  0x1c   :  { %278 = vmatprep.subr.bf16.mxu0 %v320_v1 }
  0x23   :  { %279 = vmatpush3.bf16.xpose.msra.mxu0 %v300_v8 }
  0x24   :  { %280 = vmatprep.subr.bf16.mxu0 %v320_v1 }
  0x2b   :  { %281 = vmatpush3.bf16.xpose.msra.mxu0 %v301_v9 }
  0x2c   :  { %282 = vmatprep.subr.bf16.mxu0 %v320_v1 }
  0x33   :  { %283 = vmatpush3.bf16.xpose.msra.mxu0 %v302_v12 }
  0x34   :  { %284 = vmatprep.subr.bf16.mxu0 %v320_v1 }
  0x3b   :  { %285 = vmatpush3.bf16.xpose.msra.mxu0 %v303_v13 }
  0x84   :  { %v146_v24 = vpop.permute.xlu1 %145 }
  0x85   :  { %vm147_vm3 = vcmp.eq.s32.totalorder %v139_v22, %v146_v24 }
  0x93   :  { %v23_v14 = vpop.xlane.xlu0 %22 }
  0x94   :  { %v24_v15 = vmax.f32 %v23_v14, 1e-24 }
  0x96   :  { %304 = vrsqrt.f32 %v24_v15 }
  0xa0   :  { %v305_v16 = vpop.eup %304 }
  0xa1   :  { %v26_v17 = vmul.f32 %v305_v16, %v20_v2 }
  0xa3   :  { %v27_v18 = vpack.c.bf16 %v26_v17, %v26_v17 }
  0xa5   :  { %28 = vst [vmem:[#allocation2] sm:$0xf] %v27_v18 }
  0xac   :  { %v33_v19 = vld [vmem:[#allocation2] sm:$0xf] }
  0xad   :  { %287 = vmatmul.mubr.bf16.vlgmr.msra.gmra.mrb[0].mxu0 %v33_v19 }
 0x180   :  { %v132_v23 = vpop.f32.mrb[0].mxu0 }
 0x181   :  { %v186_v25 = vmul.f32 30.0, %v132_v23  ;;  %v288_v26 = vpop.f32.mrb[1].mxu0  ;;  %v149_v30 = vsel %vm147_vm3, %v132_v23, 0.0 }
 0x182   :  { %v135_v27 = vpop.f32.mrb[2].mxu0 }
 0x183   :  { %v289_v28 = vpop.f32.mrb[3].mxu0  ;;  %v187_v29 = vsel %vm185_vm2, %v186_v25, -1e+30 }
 0x184   :  { %189 = vmax.xlane.f32.xlu0 %v187_v29 }
 0x188   :  { %150 = vadd.xlane.f32.xlu0 %v149_v30 }
 0x211   :  { %v190_v32 = vpop.xlane.xlu0 %189 }
 0x212   :  { %v191_v33 = vmax.f32 %v188_v31, %v190_v32 }
 0x214   :  { %v192_v35 = vsub.f32 %v188_v31, %v191_v33  ;;  %209 = vst.msk [vmem:[#allocation3] sm:$0xff] %vm29_vm1, %v191_v33  ;;  %199 = vperm.xlu1 %294, %v191_v33  }
 0x215   :  { %v151_v36 = vpop.xlane.xlu0 %150 }
 0x216   :  { %v152_v37 = vadd.f32 %v151_v36, %v148_v34  ;;  %v193_v54 = vmul.f32 1.442695, %v192_v35 }
 0x218   :  { %154 = vst.msk [vmem:[#allocation5] sm:$0xff] %vm29_vm1, %v152_v37 }
 0x21b   :  { %v211_v56 = vld [vmem:[#allocation3] sm:$0xff] }
 0x21f   :  { %v210_v42 = vld [vmem:[#allocation5] sm:$0xff] }
 0x220   :  { %v260_v43 = vclamps-f32 %v210_v42, 0.9999999  ;;  %v233_v58 = vmul.f32 30.0, %v210_v42 }
 0x222   :  { %v216_v44 = vmul.f32 %v260_v43, %v260_v43  ;;  %v215_v52 = vmul.f32 0.921061, %v260_v43 }
 0x224   :  { %v217_v45 = vsub.f32 1.0, %v216_v44 }
 0x226   :  { %vm220_vm4 = vcmp.eq.f32.partialorder %v217_v45, inf  ;;  %v223_v49 = vand.u32 2147483648, %v217_v45  ;;  %vm222_vm5 = vcmp.eq.f32.partialorder %v217_v45, 0.0 }
 0x293   :  { %v200_v38 = vpop.permute.xlu1 %199 }
 0x294   :  { %v202_v39 = vsub.f32 %v187_v29, %v200_v38 }
 0x296   :  { %v203_v40 = vmul.f32 1.442695, %v202_v39 }
 0x298   :  { %306 = vpow2.f32 %v203_v40 }
 0x299   :  { %308 = vrsqrt.f32 %v217_v45 }
 0x29a   :  { %310 = vpow2.f32 %v193_v54 }
 0x2a2   :  { %v307_v41 = vpop.eup %306 }
 0x2a3   :  { %205 = vadd.xlane.f32.xlu1 %v307_v41  ;;  %v309_v46 = vpop.eup %308 }
 0x2a4   :  { %v219_v47 = vmul.f32 %v309_v46, %v217_v45  ;;  %v311_v61 = vpop.eup %310 }
 0x2a5   :  { %v196_v2 = vmul.f32 %v311_v61, %v195_v62 }
 0x2a6   :  { %v221_v48 = vsel %vm220_vm4, %v217_v45, %v219_v47 }
 0x2a7   :  { %v224_v50 = vsel %vm222_vm5, %v223_v49, %v221_v48 }
 0x2a8   :  { %v225_v51 = vmul.f32 0.38941833, %v224_v50 }
 0x2aa   :  { %v226_v53 = vsub.f32 %v215_v52, %v225_v51 }
 0x2ac   :  { %v227_v55 = vmul.f32 30.0, %v226_v53 }
 0x2ae   :  { %v228_v57 = vmax.f32 %v211_v56, %v227_v55 }
 0x2b0   :  { %v229_v59 = vsub.f32 %v211_v56, %v228_v57  ;;  %v234_v60 = vsub.f32 %v233_v58, %v228_v57  ;;  %v239_v1 = vsub.f32 %v227_v55, %v228_v57 }
 0x2b2   :  { %v230_v63 = vmul.f32 1.442695, %v229_v59  ;;  %v235_v0 = vmul.f32 1.442695, %v234_v60  ;;  %v240_v5 = vmul.f32 1.442695, %v239_v1 }
 0x2b4   :  { %312 = vpow2.f32 %v230_v63 }
 0x2b5   :  { %314 = vpow2.f32 %v235_v0 }
 0x2b6   :  { %316 = vpow2.f32 %v240_v5 }
 0x2be   :  { %v313_v6 = vpop.eup %312 }
 0x2bf   :  { %v315_v9 = vpop.eup %314 }
 0x2c0   :  { %v317_v12 = vpop.eup %316 }
 0x330   :  { %v206_v3 = vpop.xlane.xlu1 %205 }
 0x331   :  { %v207_v4 = vadd.f32 %v206_v3, %v196_v2 }
 0x333   :  { %208 = vst.msk [vmem:[#allocation4] sm:$0xff] %vm29_vm1, %v207_v4 }
 0x33a   :  { %v212_v7 = vld [vmem:[#allocation4] sm:$0xff] }
 0x33b   :  { %v232_v8 = vmul.f32 %v313_v6, %v212_v7 }
 0x33d   :  { %v237_v10 = vsub.f32 %v232_v8, %v315_v9 }
 0x33f   :  { %v238_v11 = vmax.f32 %v237_v10, 0.0 }
 0x341   :  { %v242_v13 = vadd.f32 %v317_v12, %v238_v11 }
 0x343   :  { %318 = vlog2.f32 %v242_v13 }
 0x34d   :  { %v319_v14 = vpop.eup %318 }
 0x34e   :  { %v244_v15 = vmul.f32 0.6931472, %v319_v14 }
 0x350   :  { %v245_v16 = vadd.f32 %v244_v15, %v228_v57 }
 0x352   :  { %v246_v17 = vsub.f32 %v227_v55, %v245_v16 }
 0x354   :  { %247 = vst.msk [vmem:[%s387_s3] sm:$0xff] %vm29_vm1, %v246_v17 }

</bundles_post_ra>
